<compile_context>
chip_gen: v7x
topology: tpu7x:2x2x1
jax: 0.10.0
libtpu: 0.0.40
codegen_flags: <defaults>
</compile_context>

<pallas_src>
import functools

import jax
import jax.numpy as jnp
from jax.experimental import pallas as pl
from jax.experimental.pallas import tpu as pltpu


def _round_up(v, m):
    return ((v + m - 1) // m) * m


def _is_wide_mxu():
    """True on 256-wide-MXU generations (v6e / v7x); False on v5e and older."""
    try:
        dk = jax.devices()[0].device_kind.lower()
    except Exception:
        return True
    return ("v6" in dk) or ("v7" in dk)


def _choose_tile_n(n, max_tile):
    """Largest multiple-of-8 divisor of n that is <= max_tile, else n itself."""
    if n <= max_tile:
        return n
    start = (max_tile // 8) * 8
    for t in range(start, 7, -8):
        if n % t == 0:
            return t
    # TODO(synk): awkward N (no multiple-of-8 divisor <= max_tile) falls back to
    # full-N row tiles; a pad-and-mask path would bound VMEM for prime-ish N.
    return n


def _choose_tile_k(k_total, max_k=2048):
    """Largest multiple-of-128 divisor of k_total <= max_k, else full depth."""
    if k_total <= max_k:
        return k_total
    start = (max_k // 128) * 128
    for t in range(start, 127, -128):
        if k_total % t == 0:
            return t
    # TODO(synk): contraction depth with no multiple-of-128 divisor -> full-depth
    # (un-tiled) contraction; may exceed the VMEM budget for very large N*J.
    return k_total


def _choose_rows(total, fp):
    """Row block for the elementwise pass: big (<=1024), multiple of 8, divides total."""
    cap = min(1024, max(8, ((24 << 20) // (12 * fp)) // 8 * 8))
    if total <= cap:
        return total
    start = (min(cap, total) // 8) * 8
    for t in range(start, 7, -8):
        if total % t == 0:
            return t
    # TODO(synk): pathological row count with no small multiple-of-8 divisor;
    # full-slab fallback may exceed VMEM for huge inputs.
    return total


def _vmem_limit(block_bytes):
    """Scoped-VMEM request: estimated bytes + headroom, clamped to 48 MiB (v7x-safe)."""
    est = block_bytes + block_bytes // 2 + (2 << 20)
    return int(min(max(est, 8 << 20), 48 << 20))


# ---------------------------------------------------------------------------
# Pass 1: K-tiled fused gmul + nn.Linear, plus per-tile BN partial statistics.
# ---------------------------------------------------------------------------
def _gconv_matmul_kernel(w_ref, u_ref, z_ref, ps_ref, acc_ref):
    # w_ref : (1, TILE_N, TILE_K) f32   row/K-tile of W viewed as (B, N, N*J)
    # u_ref : (1, TILE_K, Fp)     bf16  projected features, rows k = n2*J + j
    # z_ref : (1, TILE_N, Fp)     bf16  un-normalized linear output tile
    # ps_ref: (1, 1, 2, Fp)       f32   per-tile [sum ; sum-of-squares]
    # acc_ref: (TILE_N, Fp)       f32   K-accumulator scratch
    k = pl.program_id(2)

    @pl.when(k == 0)
    def _():
        acc_ref[...] = jnp.zeros_like(acc_ref)

    # bf16 x bf16 -> f32 is the native single-pass MXU path. W is cast here so
    # the largest tensor is read from HBM exactly once, with no prepass.
    acc_ref[...] += jnp.dot(w_ref[0].astype(jnp.bfloat16), u_ref[0],
                            preferred_element_type=jnp.float32)

    @pl.when(k == pl.num_programs(2) - 1)
    def _():
        z = acc_ref[...]
        z_ref[0] = z.astype(z_ref.dtype)
        # Partial BatchNorm statistics for this row tile (reduced over rows).
        s1 = jnp.sum(z, axis=0, keepdims=True)                  # (1, Fp)
        s2 = jnp.sum(z * z, axis=0, keepdims=True)              # (1, Fp)
        ps_ref[0, 0] = jnp.concatenate([s1, s2], axis=0)        # (2, Fp)


# ---------------------------------------------------------------------------
# Pass 2: pure elementwise scale/shift (BN normalize, or bias add if no BN).
# ---------------------------------------------------------------------------
def _scale_shift_kernel(z_ref, scale_ref, shift_ref, o_ref):
    o_ref[...] = z_ref[...].astype(jnp.float32) * scale_ref[...] + shift_ref[...]


@functools.partial(jax.jit, static_argnames=("bn_bool", "eps"))
def gconv_forward(W, x, fc_w, fc_b, gamma, beta, *, bn_bool=True, eps=1e-5):
    """Pallas implementation of Gconv.forward. Returns (W, out)."""
    B, N, N2, J = W.shape
    assert N == N2
    C = x.shape[-1]
    F = fc_w.shape[0]
    assert fc_w.shape == (F, J * C)

    wide = _is_wide_mxu()
    lane_pad = 256 if (wide and F > 128) else 128
    Fp = max(128, _round_up(F, lane_pad))       # lane-dense (MXU-width) slab
    TILE_N = _choose_tile_n(N, 256 if wide else 128)
    NT = N // TILE_N
    K = N * J
    TILE_K = _choose_tile_k(K)
    KT = K // TILE_K

    # ---- layout plumbing -----------------------------------------------------
    # Pure reshape (contiguous, free): contraction index k = n2*J + j.
    Wf = W.reshape(B, N, K)

    # Per-operator projection, hoisted out of the grid: computed once per batch
    # element as one bf16 matmul; u[b, n2*J + j, f] = sum_c x[b,n2,c]*fc_w[f, j*C+c].
    fcw = jnp.transpose(fc_w.reshape(F, J, C), (2, 1, 0))        # (C, J, F)
    fcw = jnp.pad(fcw, ((0, 0), (0, 0), (0, Fp - F)))            # (C, J, Fp)
    fcw_flat = fcw.reshape(C, J * Fp).astype(jnp.bfloat16)
    u = jnp.dot(x.astype(jnp.bfloat16).reshape(B * N, C), fcw_flat,
                preferred_element_type=jnp.float32)
    u = u.astype(jnp.bfloat16).reshape(B, K, Fp)                 # rows k = n2*J + j

    # ---- pass 1: z = Wf @ u (+ BN partial stats) ------------------------------
    blk1 = (2 * TILE_N * TILE_K * 4          # W f32 blocks (double-buffered)
            + TILE_N * TILE_K * 2            # in-kernel bf16 W copy
            + 2 * TILE_K * Fp * 2            # u bf16 blocks (double-buffered)
            + 2 * TILE_N * Fp * 2            # z bf16 out blocks (double-buffered)
            + 2 * 8 * Fp * 4                 # stats out blocks (sublane-padded)
            + TILE_N * Fp * 4                # f32 accumulator scratch
            + TILE_N * Fp * 4 + 8 * Fp * 4)  # in-kernel f32 temps
    z, pstats = pl.pallas_call(
        _gconv_matmul_kernel,
        out_shape=(
            jax.ShapeDtypeStruct((B, N, Fp), jnp.bfloat16),
            jax.ShapeDtypeStruct((B, NT, 2, Fp), jnp.float32),
        ),
        grid_spec=pltpu.PrefetchScalarGridSpec(
            num_scalar_prefetch=0,
            grid=(B, NT, KT),
            in_specs=[
                pl.BlockSpec((1, TILE_N, TILE_K), lambda b, nt, kt: (b, nt, kt)),
                pl.BlockSpec((1, TILE_K, Fp), lambda b, nt, kt: (b, kt, 0)),
            ],
            out_specs=(
                pl.BlockSpec((1, TILE_N, Fp), lambda b, nt, kt: (b, nt, 0)),
                pl.BlockSpec((1, 1, 2, Fp), lambda b, nt, kt: (b, nt, 0, 0)),
            ),
            scratch_shapes=[pltpu.VMEM((TILE_N, Fp), jnp.float32)],
        ),
        compiler_params=pltpu.CompilerParams(
            dimension_semantics=("parallel", "parallel", "arbitrary"),
            vmem_limit_bytes=_vmem_limit(blk1)),
    )(Wf, u)

    # ---- BN stats reduced ONCE (tiny); pass 2 gets only (1, Fp) scale/shift ---
    gam_p = jnp.pad(gamma.astype(jnp.float32), (0, Fp - F))
    bet_p = jnp.pad(beta.astype(jnp.float32), (0, Fp - F))
    fcb_p = jnp.pad(fc_b.astype(jnp.float32), (0, Fp - F))
    if bn_bool:
        s = jnp.sum(pstats, axis=(0, 1))                         # (2, Fp)
        inv_cnt = 1.0 / float(B * N)
        mean = s[0] * inv_cnt
        # Single-pass E[x^2]-E[x]^2 in f32; adequate for BN-scale activations.
        var = s[1] * inv_cnt - mean * mean
        scale = jax.lax.rsqrt(var + eps) * gam_p
        shift = bet_p - mean * scale
        # NOTE: fc bias is omitted from z — it is exactly cancelled by the mean
        # subtraction, so the result matches Linear + BatchNorm1d.
    else:
        scale = jnp.ones((Fp,), jnp.float32)
        shift = fcb_p                                            # plain Linear bias
    scale = scale.reshape(1, Fp)
    shift = shift.reshape(1, Fp)

    # ---- pass 2: elementwise normalize over flattened rows --------------------
    R = B * N
    ROWS = _choose_rows(R, Fp)
    z2 = z.reshape(R, Fp)                                        # free reshape
    blk2 = (2 * ROWS * Fp * 2        # z bf16 blocks (double-buffered)
            + 2 * ROWS * Fp * 4      # f32 out blocks (double-buffered)
            + ROWS * Fp * 4          # in-kernel f32 temp
            + 4 * Fp * 4)            # scale / shift
    out = pl.pallas_call(
        _scale_shift_kernel,
        out_shape=jax.ShapeDtypeStruct((R, Fp), jnp.float32),
        grid_spec=pltpu.PrefetchScalarGridSpec(
            num_scalar_prefetch=0,
            grid=(R // ROWS,),
            in_specs=[
                pl.BlockSpec((ROWS, Fp), lambda r: (r, 0)),
                pl.BlockSpec((1, Fp), lambda r: (0, 0)),
                pl.BlockSpec((1, Fp), lambda r: (0, 0)),
            ],
            out_specs=pl.BlockSpec((ROWS, Fp), lambda r: (r, 0)),
        ),
        compiler_params=pltpu.CompilerParams(
            dimension_semantics=("parallel",),
            vmem_limit_bytes=_vmem_limit(blk2)),
    )(z2, scale, shift)

    out = out.reshape(B, N, Fp)
    if Fp != F:
        out = out[..., :F]          # crop skipped entirely when F is lane-dense
    # TODO(synk): BatchNorm1d running_mean / running_var buffer updates (mutable
    # module state) are not modeled; inference-mode BN unsupported.
    return W, out


def gconv_ref(W, x, fc_w, fc_b, gamma, beta, *, bn_bool=True, eps=1e-5):
    """Pure-JAX reference matching the PyTorch forward (training-mode BN)."""
    B, N, _, J = W.shape
    y = jnp.concatenate(
        [jnp.einsum('bnm,bmc->bnc', W[..., j], x) for j in range(J)], axis=-1)
    z = y.reshape(-1, y.shape[-1]) @ fc_w.T + fc_b
    if bn_bool:
        mean = z.mean(axis=0)
        var = ((z - mean) ** 2).mean(axis=0)
        z = (z - mean) / jnp.sqrt(var + eps) * gamma + beta
    return z.reshape(B, N, -1)


if __name__ == "__main__":
    B, N, J, C, Fout = 2, 8, 2, 4, 8   # batch=2, nodes=8, J=2, nf_input=4, nf_output=8

    key = jax.random.PRNGKey(0)
    kW, kx, kw, kb = jax.random.split(key, 4)
    W = jax.random.normal(kW, (B, N, N, J), jnp.float32)
    x = jax.random.normal(kx, (B, N, C), jnp.float32)

    # deterministic parameter init (nn.Linear-style uniform, BN gamma=1/beta=0)
    bound = 1.0 / float(jnp.sqrt(J * C))
    fc_w = jax.random.uniform(kw, (Fout, J * C), jnp.float32, -bound, bound)
    fc_b = jax.random.uniform(kb, (Fout,), jnp.float32, -bound, bound)
    gamma = jnp.ones((Fout,), jnp.float32)
    beta = jnp.zeros((Fout,), jnp.float32)

    W_out, out = gconv_forward(W, x, fc_w, fc_b, gamma, beta, bn_bool=True)
    out = jax.block_until_ready(out)

    # Reference in f32 from bf16-quantized W / x / fc_w (both kernel matmuls run
    # the MXU in bf16, and z is stored bf16); bf16-level tolerance.
    q = lambda a: a.astype(jnp.bfloat16).astype(jnp.float32)
    ref = gconv_ref(q(W), q(x), q(fc_w), fc_b, gamma, beta, bn_bool=True)

    assert out.shape == (B, N, Fout)
    assert jnp.allclose(out, ref, atol=4e-2, rtol=4e-2), "mismatch vs reference"
    print("KERNEL_OK")
</pallas_src>

<mosaic_0001>
module attributes {stable_mosaic.version = 11 : i64} {
  func.func @_gconv_matmul_kernel(%arg0: i32, %arg1: i32, %arg2: i32, %arg3: memref<1x8x16xf32, #tpu.memory_space<vmem>>, %arg4: memref<1x16x128xbf16, #tpu.memory_space<vmem>>, %arg5: memref<1x8x128xbf16, #tpu.memory_space<vmem>>, %arg6: memref<1x1x2x128xf32, #tpu.memory_space<vmem>>, %arg7: memref<8x128xf32, #tpu.memory_space<vmem>>) attributes {dimension_semantics = [#tpu.dimension_semantics<parallel>, #tpu.dimension_semantics<parallel>, #tpu.dimension_semantics<arbitrary>], iteration_bounds = array<i64: 2, 1, 1>, scalar_prefetch = 0 : i64, scratch_operands = 1 : i64, tpu.core_type = #tpu.core_type<tc>, window_params = [{transform_indices = @transform_0, window_bounds = array<i64: 1, 8, 16>}, {transform_indices = @transform_1, window_bounds = array<i64: 1, 16, 128>}, {transform_indices = @transform_2, window_bounds = array<i64: 1, 8, 128>}, {transform_indices = @transform_3, window_bounds = array<i64: 1, 1, 2, 128>}]} {
    %c0_i32 = arith.constant 0 : i32
    %0 = arith.cmpi eq, %arg2, %c0_i32 : i32
    %1 = arith.extui %0 : i1 to i32
    %c0_i32_0 = arith.constant 0 : i32
    %2 = arith.cmpi ne, %1, %c0_i32_0 : i32
    scf.if %2 {
      %cst_12 = arith.constant 0.000000e+00 : f32
      %15 = vector.broadcast %cst_12 : f32 to vector<8x128xf32>
      %c0_13 = arith.constant 0 : index
      %c0_14 = arith.constant 0 : index
      %16 = vector.load %arg7[%c0_13, %c0_14] : memref<8x128xf32, #tpu.memory_space<vmem>>, vector<8x128xf32>
      tpu.vector_store %arg7[%c0_13, %c0_14], %15 {strides = array<i32>} : memref<8x128xf32, #tpu.memory_space<vmem>>, vector<8x128xf32>,
    } else {
    }
    %c0 = arith.constant 0 : index
    %c0_1 = arith.constant 0 : index
    %3 = vector.load %arg7[%c0, %c0_1] : memref<8x128xf32, #tpu.memory_space<vmem>>, vector<8x128xf32>
    %c0_2 = arith.constant 0 : index
    %c0_3 = arith.constant 0 : index
    %c0_4 = arith.constant 0 : index
    %4 = vector.load %arg3[%c0_2, %c0_3, %c0_4] : memref<1x8x16xf32, #tpu.memory_space<vmem>>, vector<1x8x16xf32>
    %5 = vector.shape_cast %4 : vector<1x8x16xf32> to vector<8x16xf32>
    %6 = arith.truncf %5 : vector<8x16xf32> to vector<8x16xbf16>
    %c0_5 = arith.constant 0 : index
    %c0_6 = arith.constant 0 : index
    %c0_7 = arith.constant 0 : index
    %7 = vector.load %arg4[%c0_5, %c0_6, %c0_7] : memref<1x16x128xbf16, #tpu.memory_space<vmem>>, vector<1x16x128xbf16>
    %8 = vector.shape_cast %7 : vector<1x16x128xbf16> to vector<16x128xbf16>
    %cst = arith.constant dense<0.000000e+00> : vector<8x128xf32>
    %9 = tpu.matmul %6, %8, %cst {dimension_numbers = #tpu.dot_dimension_numbers<[1], [0], [0], [1], [0, 0, 1, 1], [], []>} : vector<8x16xbf16>, vector<16x128xbf16>, vector<8x128xf32> -> vector<8x128xf32>
    %10 = arith.addf %3, %9 : vector<8x128xf32>
    %c0_8 = arith.constant 0 : index
    %c0_9 = arith.constant 0 : index
    %11 = vector.load %arg7[%c0_8, %c0_9] : memref<8x128xf32, #tpu.memory_space<vmem>>, vector<8x128xf32>
    tpu.vector_store %arg7[%c0_8, %c0_9], %10 {strides = array<i32>} : memref<8x128xf32, #tpu.memory_space<vmem>>, vector<8x128xf32>,
    %c0_i32_10 = arith.constant 0 : i32
    %12 = arith.cmpi eq, %arg2, %c0_i32_10 : i32
    %13 = arith.extui %12 : i1 to i32
    %c0_i32_11 = arith.constant 0 : i32
    %14 = arith.cmpi ne, %13, %c0_i32_11 : i32
    scf.if %14 {
      %c0_12 = arith.constant 0 : index
      %c0_13 = arith.constant 0 : index
      %15 = vector.load %arg7[%c0_12, %c0_13] : memref<8x128xf32, #tpu.memory_space<vmem>>, vector<8x128xf32>
      %16 = arith.truncf %15 : vector<8x128xf32> to vector<8x128xbf16>
      %c0_14 = arith.constant 0 : index
      %c0_15 = arith.constant 0 : index
      %c0_16 = arith.constant 0 : index
      %17 = vector.load %arg5[%c0_14, %c0_15, %c0_16] : memref<1x8x128xbf16, #tpu.memory_space<vmem>>, vector<1x8x128xbf16>
      %18 = vector.shape_cast %17 : vector<1x8x128xbf16> to vector<8x128xbf16>
      %19 = vector.shape_cast %16 : vector<8x128xbf16> to vector<1x8x128xbf16>
      tpu.vector_store %arg5[%c0_14, %c0_15, %c0_16], %19 {strides = array<i32>} : memref<1x8x128xbf16, #tpu.memory_space<vmem>>, vector<1x8x128xbf16>,
      %cst_17 = arith.constant dense<0.000000e+00> : vector<128xf32>
      %20 = vector.multi_reduction <add>, %15, %cst_17 [0] : vector<8x128xf32> to vector<128xf32>
      %21 = vector.shape_cast %20 : vector<128xf32> to vector<1x128xf32>
      %22 = arith.mulf %15, %15 : vector<8x128xf32>
      %cst_18 = arith.constant dense<0.000000e+00> : vector<128xf32>
      %23 = vector.multi_reduction <add>, %22, %cst_18 [0] : vector<8x128xf32> to vector<128xf32>
      %24 = vector.shape_cast %23 : vector<128xf32> to vector<1x128xf32>
      %25 = tpu.concatenate %21, %24 in 0 : vector<1x128xf32>, vector<1x128xf32> -> vector<2x128xf32>
      %c0_19 = arith.constant 0 : index
      %c0_20 = arith.constant 0 : index
      %c0_21 = arith.constant 0 : index
      %c0_22 = arith.constant 0 : index
      %26 = vector.load %arg6[%c0_19, %c0_20, %c0_21, %c0_22] : memref<1x1x2x128xf32, #tpu.memory_space<vmem>>, vector<1x1x2x128xf32>
      %27 = vector.shape_cast %26 : vector<1x1x2x128xf32> to vector<2x128xf32>
      %28 = vector.shape_cast %25 : vector<2x128xf32> to vector<1x1x2x128xf32>
      tpu.vector_store %arg6[%c0_19, %c0_20, %c0_21, %c0_22], %28 {strides = array<i32>} : memref<1x1x2x128xf32, #tpu.memory_space<vmem>>, vector<1x1x2x128xf32>,
    } else {
    }
    return
  }
  func.func @transform_0(%arg0: i32, %arg1: i32, %arg2: i32) -> (i32, i32, i32) {
    %c0_i32 = arith.constant 0 : i32
    return %arg0, %arg1, %arg2 : i32, i32, i32
  }
  func.func @transform_1(%arg0: i32, %arg1: i32, %arg2: i32) -> (i32, i32, i32) {
    %c0_i32 = arith.constant 0 : i32
    %c0_i32_0 = arith.constant 0 : i32
    return %arg0, %arg2, %c0_i32 : i32, i32, i32
  }
  func.func @transform_2(%arg0: i32, %arg1: i32, %arg2: i32) -> (i32, i32, i32) {
    %c0_i32 = arith.constant 0 : i32
    %c0_i32_0 = arith.constant 0 : i32
    return %arg0, %arg1, %c0_i32 : i32, i32, i32
  }
  func.func @transform_3(%arg0: i32, %arg1: i32, %arg2: i32) -> (i32, i32, i32, i32) {
    %c0_i32 = arith.constant 0 : i32
    %c0_i32_0 = arith.constant 0 : i32
    %c0_i32_1 = arith.constant 0 : i32
    return %arg0, %arg1, %c0_i32, %c0_i32_0 : i32, i32, i32, i32
  }
}

module attributes {stable_mosaic.version = 11 : i64} {
  func.func @_scale_shift_kernel(%arg0: i32, %arg1: memref<16x128xbf16, #tpu.memory_space<vmem>>, %arg2: memref<1x128xf32, #tpu.memory_space<vmem>>, %arg3: memref<1x128xf32, #tpu.memory_space<vmem>>, %arg4: memref<16x128xf32, #tpu.memory_space<vmem>>) attributes {dimension_semantics = [#tpu.dimension_semantics<parallel>], iteration_bounds = array<i64: 1>, scalar_prefetch = 0 : i64, scratch_operands = 0 : i64, tpu.core_type = #tpu.core_type<tc>, window_params = [{transform_indices = @transform_0, window_bounds = array<i64: 16, 128>}, {pipeline_mode = #tpu.pipeline_mode<synchronous>, transform_indices = @transform_1, window_bounds = array<i64: 1, 128>}, {pipeline_mode = #tpu.pipeline_mode<synchronous>, transform_indices = @transform_2, window_bounds = array<i64: 1, 128>}, {transform_indices = @transform_3, window_bounds = array<i64: 16, 128>}]} {
    %c0 = arith.constant 0 : index
    %c0_0 = arith.constant 0 : index
    %0 = vector.load %arg1[%c0, %c0_0] : memref<16x128xbf16, #tpu.memory_space<vmem>>, vector<16x128xbf16>
    %1 = arith.extf %0 : vector<16x128xbf16> to vector<16x128xf32>
    %c0_1 = arith.constant 0 : index
    %c0_2 = arith.constant 0 : index
    %2 = vector.load %arg2[%c0_1, %c0_2] : memref<1x128xf32, #tpu.memory_space<vmem>>, vector<1x128xf32>
    %3 = vector.broadcast %2 : vector<1x128xf32> to vector<16x128xf32>
    %4 = arith.mulf %1, %3 : vector<16x128xf32>
    %c0_3 = arith.constant 0 : index
    %c0_4 = arith.constant 0 : index
    %5 = vector.load %arg3[%c0_3, %c0_4] : memref<1x128xf32, #tpu.memory_space<vmem>>, vector<1x128xf32>
    %6 = vector.broadcast %5 : vector<1x128xf32> to vector<16x128xf32>
    %7 = arith.addf %4, %6 : vector<16x128xf32>
    %c0_5 = arith.constant 0 : index
    %c0_6 = arith.constant 0 : index
    %8 = vector.load %arg4[%c0_5, %c0_6] : memref<16x128xf32, #tpu.memory_space<vmem>>, vector<16x128xf32>
    tpu.vector_store %arg4[%c0_5, %c0_6], %7 {strides = array<i32>} : memref<16x128xf32, #tpu.memory_space<vmem>>, vector<16x128xf32>,
    return
  }
  func.func @transform_0(%arg0: i32) -> (i32, i32) {
    %c0_i32 = arith.constant 0 : i32
    %c0_i32_0 = arith.constant 0 : i32
    return %arg0, %c0_i32 : i32, i32
  }
  func.func @transform_1(%arg0: i32) -> (i32, i32) {
    %c0_i32 = arith.constant 0 : i32
    %c0_i32_0 = arith.constant 0 : i32
    %c0_i32_1 = arith.constant 0 : i32
    return %c0_i32, %c0_i32_0 : i32, i32
  }
  func.func @transform_2(%arg0: i32) -> (i32, i32) {
    %c0_i32 = arith.constant 0 : i32
    %c0_i32_0 = arith.constant 0 : i32
    %c0_i32_1 = arith.constant 0 : i32
    return %c0_i32, %c0_i32_0 : i32, i32
  }
  func.func @transform_3(%arg0: i32) -> (i32, i32) {
    %c0_i32 = arith.constant 0 : i32
    %c0_i32_0 = arith.constant 0 : i32
    return %arg0, %c0_i32 : i32, i32
  }
}

</mosaic_0001>

<bundles_post_ra>
// kernel: gconv_forward.2
= control target key start
LH: loop header
LB: loop body
LE: loop exit
PB: predicated region body
PF: predicated region fallthrough
CT: control target
= control target key end

     0   :  { %s590_s12 = smov 0   ;;  %s592_s13 = smov 0   ;;  %s634_s0 = inlined_call_operand.vmem [shape: f32[2,8,16], index: 0, kind: input, shape index: {}]   ;;  %s635_s1 = inlined_call_operand.vmem [shape: bf16[2,16,128], index: 1, kind: input, shape index: {}]   ;;  %s636_s2 = inlined_call_operand.vmem [shape: bf16[2,8,128], index: 2, kind: output, shape index: {0}]   ;;  %s637_s3 = inlined_call_operand.vmem [shape: f32[2,1,2,128], index: 3, kind: output, shape index: {1}]  }
   0x1   :  { %s594_s14 = smov 0  }
   0x2 LB: > { %s33_s15 = sadd.s32 1, %s562_s13  ;;  %p498_p0 = scmp.ge.s32.totalorder %s566_s14, 1  ;;  %s566_s14 = sphi %s594_s14, %s14_s14   ;;  %s562_s13 = sphi %s592_s13, %s639_s13   ;;  %s558_s12 = sphi %s590_s12, %s638_s12  }
   0x3   : > { %p35_p1 = scmp.ge.s32.totalorder %s33_s15, 2  ;;  %p189_p2 = scmp.lt.s32.totalorder %s566_s14, 3 }
   0x5   : > { %s641_s15 = smov (%p35_p1, %s33_s15), 0  ;;  %p190_p3 = pnand %p498_p0, %p189_p2 }
   0x6   : > { %p236_p4 = scmp.lt.s32.totalorder (!%p190_p3), %s558_s12, 1  ;;  %v568_v0 = vmov (!%p190_p3), 0.0   ;;  %vm569_vm0 = vmmov (!%p190_p3), 0   ;;  %vm287_vm1 = vcmask (!%p190_p3), 130048   ;;  %vm352_vm2 = vcmask (!%p190_p3), 1040384  }
   0x7   : > { %193 = sbr.rel (%p190_p3) target bundleno = 250 (0xfa), region = 28  ;;  %511 = vmatprep.subr.bf16.mxu0 (!%p190_p3), %v568_v0  ;;  %513 = vmatprep.mubr.msk.bf16.mxu0 (!%p190_p3), %vm569_vm0, %v568_v0 }
   0xe   : > { %s643_s12 = smov (!%p236_p4, %s558_s12), 1 }
   0xf   : > { %s499_s16 = sshll.u32 %s643_s12, 3  ;;  %s502_s23 = sshll.u32 %s643_s12, 2 }
  0x10   : > { %s245_s19 = scalar_lea.vmem %s634_s0, %s499_s16  ;;  %s254_s22 = scalar_lea.vmem %s635_s1, %s499_s16 }
  0x11   : > { %v277_v1 = vld [vmem:[%s245_s19] sm:$0xff]  ;;  %s262_s26 = scalar_lea.vmem %s636_s2, %s502_s23  ;;  %s503_s27 = sshll.u32 %s643_s12, 1 }
  0x12   : > { %v543_v2 = vld [vmem:[%s254_s22] sm:$0xff]   ;;  %v278_v3 = vpack.c.bf16 %v277_v1, %v277_v1  ;;  %s269_s30 = scalar_lea.vmem %s637_s3, %s503_s27 }
  0x13   : > { %512 = vmatpush3.bf16.msra.mxu0 %v543_v2 }
  0x16   : > { %514 = vmatmul.mubr.msk.bf16.vlgmr.msra.gmra.mrb[0].mxu0 %vm287_vm1, %v278_v3 }
  0xe9   : > { %v325_v4 = vpop.f32.mrb[0].mxu0 }
  0xea   : > { %v337_v5 = vpack.c.bf16 %v325_v4, %v325_v4  ;;  %v339_v6 = vrot.slane %v325_v4, 4  ;;  %v345_v7 = vmul.f32 %v325_v4, %v325_v4  ;;  %v515_v8 = vpop.f32.mrb[1].mxu0 }
  0xeb   : > { %v328_v9 = vpop.f32.mrb[2].mxu0 }
  0xec   : > { %338 = vst [vmem:[%s262_s26] sm:$0xf] %v337_v5  ;;  %v340_v10 = vadd.f32 %v339_v6, %v325_v4  ;;  %v346_v11 = vrot.slane %v345_v7, 4  ;;  %v516_v12 = vpop.f32.mrb[3].mxu0 }
  0xee   : > { %v341_v13 = vrot.slane %v340_v10, 2  ;;  %v347_v14 = vadd.f32 %v346_v11, %v345_v7 }
  0xf0   : > { %v342_v15 = vadd.f32 %v341_v13, %v340_v10  ;;  %v348_v16 = vrot.slane %v347_v14, 2 }
  0xf2   : > { %v343_v17 = vrot.slane %v342_v15, 1  ;;  %v349_v18 = vadd.f32 %v348_v16, %v347_v14 }
  0xf4   : > { %v350_v19 = vrot.slane %v349_v18, 1  ;;  %v344_v20 = vadd.f32 %v343_v17, %v342_v15 }
  0xf6   : > { %v351_v21 = vadd.f32 %v350_v19, %v349_v18 }
  0xf8   : > { %v353_v22 = vsel %vm352_vm2, %v344_v20, %v351_v21 }
  0xf9   : > { %354 = vst [vmem:[%s269_s30] sm:$0x3] %v353_v22 }
  0xfa PF: > { %s14_s14 = sadd.s32 1, %s566_s14   ;;  %s638_s12 = smov %s562_s13 }
  0xfb   : > { %p11_p5 = scmp.ge.s32.totalorder %s14_s14, 4   ;;  %s639_s13 = smov %s641_s15 }
  0xfd   :  { %13 = sbr.rel (!%p11_p5) target bundleno = 2 (0x2), region = 81 }

// kernel: gconv_forward.3
= control target key start
LH: loop header
LB: loop body
LE: loop exit
PB: predicated region body
PF: predicated region fallthrough
CT: control target
= control target key end

     0   :  { %s132_s0 = inlined_call_operand.vmem [shape: bf16[16,128], index: 0, kind: input, shape index: {}]   ;;  %s133_s1 = inlined_call_operand.vmem [shape: f32[1,128], index: 1, kind: input, shape index: {}]   ;;  %s134_s2 = inlined_call_operand.vmem [shape: f32[1,128], index: 2, kind: input, shape index: {}]   ;;  %s135_s3 = inlined_call_operand.hbm [shape: f32[16,128], index: 3, kind: output, shape index: {}]  }
   0x1   :  { %v58_v0 = vld [vmem:[%s132_s0] sm:$0xff]  }
   0x2   :  { %v55_v1 = vld [vmem:[%s133_s1] ss:$0 sm:$0xff]  ;;  %v59_v2 = vunpack.c.l.bf16 %v58_v0  ;;  %v60_v3 = vunpack.c.h.bf16 %v58_v0 }
   0x3   :  { %8 = vsyncpa [#allocation3], 0  ;;  %v56_v4 = vld [vmem:[%s134_s2] ss:$0 sm:$0xff]  ;;  %s88_s18 = smov [#allocation2]  }
   0x4   :  { %s44_s19 = sshll.u32 %s88_s18, 4  ;;  %v26_v5 = vmul.f32 %v59_v2, %v55_v1  ;;  %v27_v6 = vmul.f32 %v60_v3, %v55_v1  ;;  %s45_s19 = int_to_ptr.vmem [resolvable:$true] %s44_s19 }
   0x5   :  { %s64_s0 = scalar_lea.vmem %s45_s19, 256  ;;  %p69_p1 = scmp.lt.s32.totalorder %s45_s19, %s45_s19 }
   0x6   :  { %v35_v7 = vadd.f32 %v56_v4, %v26_v5  ;;  %v36_v8 = vadd.f32 %v56_v4, %v27_v6  ;;  %p65_p0 = scmp.ne.s32.totalorder %s45_s19, %s64_s0  ;;  %p70_p2 = scmp.lt.s32.totalorder %s64_s0, %s64_s0 }
   0x8   :  { %37 = vst [vmem:[#allocation2] sm:$0xff] %v35_v7  ;;  %38 = vst [vmem:[#allocation2 + $0x8] sm:$0xff] %v36_v8  ;;  %p71_p3 = por %p70_p2, %p69_p1 }
   0xa   :  { %p72_p4 = pnand %p71_p3, %p65_p0 }
   0xc   :  { %75 = shalt.err (!%p72_p4)
}
   0xd   :  { %s76_s2 = scalar_lea.hbm %s135_s3, 256 }
   0xe   :  { %p77_p5 = scmp.ne.s32.totalorder %s135_s3, %s76_s2  ;;  %p80_p6 = scmp.lt.u32.totalorder %s76_s2, %s135_s3 }
  0x10   :  { %p82_p7 = pnand %p80_p6, %p77_p5 }
  0x12   :  { %85 = shalt.err (!%p82_p7)
}
  0x13   :  { %s89_s25 = smov 128   ;;  %s90_s26 = smov 8  }
  0x14   :  { %50 = dma.vmem_to_hbm [thread:$0]  %s45_s19, 256, %s135_s3, [#allocation3], %s89_s25, %s89_s25, %s90_s26  }
  0x15   :  { %86 = dma.done.wait [#allocation3], 256  }
  0x16   :  { %87 = vsyncadd [#allocation3], 4294967040 }
  0x17   :  { %54 = vsyncpa [#allocation3], 1 }

</bundles_post_ra>
